<compile_context>
chip_gen: v5e
topology: v5e:2x2
jax: 0.10.0
libtpu: 0.0.40
codegen_flags: <defaults>
</compile_context>

<pallas_src>
import functools
import math

import jax
import jax.numpy as jnp
import numpy as np
from jax import lax
from jax.experimental import pallas as pl
from jax.experimental.pallas import tpu as pltpu

_NEG = -3.0e38  # stands in for -inf in the maxpool edge masking


def _block_kernel(xpad_ref, wbig_ref, b1_ref, w2_ref, bout_ref,
                  out_ref, slab_ref, hp_ref, *,
                  L, L1, stride, d0, d1, pad1, PL, proj, depthwise):
    f32 = jnp.float32
    P = out_ref.shape[-1]
    Cin = xpad_ref.shape[-1]

    # ---- shared (possibly strided) row-slab loads from the zero-padded x ----
    # conv1 taps and maxpool taps hit the same offsets when d0 == 1, stride == 2;
    # dedup so each slab is loaded once.
    loads = {}

    def load(start, step):
        key = (start, step)
        if key not in loads:
            if step == 1:
                loads[key] = xpad_ref[pl.ds(start, L1), :]
            else:
                loads[key] = xpad_ref[pl.ds(start, L1, step), :]
        return loads[key]

    conv_taps = [load(PL - pad1 + k * d0, stride) for k in range(3)]
    for k in range(3):
        slab_ref[:, k * Cin:(k + 1) * Cin] = conv_taps[k]

    if proj:
        # MaxPool1d(k=3, s=2, p=1): zero-padded reads, pad columns masked to -inf.
        pool = [load(PL - 1 + k, 2).astype(f32) for k in range(3)]
        rows = lax.broadcasted_iota(jnp.int32, (L1, Cin), 0)
        t0 = jnp.where(rows >= 1, pool[0], _NEG)           # left pad column
        t2 = pool[2]
        if 2 * (L1 - 1) + 1 >= L:                          # right pad column
            t2 = jnp.where(rows < (L // 2), t2, _NEG)
        mp = jnp.maximum(jnp.maximum(t0, pool[1]), t2)
        slab_ref[:, 3 * Cin:4 * Cin] = mp.astype(slab_ref.dtype)

    # ---- one MXU matmul: conv1 [+ shortcut 1x1], BN scales pre-folded ----
    big = jnp.dot(slab_ref[...], wbig_ref[...], preferred_element_type=f32)
    h = jnp.maximum(big[:, :P] + b1_ref[...], 0.0)         # bn1 bias + ReLU
    if proj:
        sc = big[:, P:]                                    # maxpool -> 1x1 -> bn_sc
    else:
        sc = load(PL, stride).astype(f32)                  # identity shortcut

    # ---- conv2 ("same", dilation d1, grouped) + bn2 via zero-padded scratch ----
    w2 = w2_ref[...]
    hp_ref[0:d1, :] = jnp.zeros((d1, P), f32)              # re-zero pad rows
    hp_ref[d1 + L1:d1 + L1 + d1, :] = jnp.zeros((d1, P), f32)
    hp_ref[d1:d1 + L1, :] = h
    if depthwise:                                          # groups == planes: VPU
        acc2 = (hp_ref[0:L1, :] * w2[0]
                + h * w2[1]
                + hp_ref[2 * d1:2 * d1 + L1, :] * w2[2])
    else:                                                  # group size > 1 fallback
        acc2 = jnp.zeros((L1, P), f32)
        for k in range(3):
            acc2 = acc2 + jnp.dot(hp_ref[k * d1:k * d1 + L1, :], w2[k],
                                  preferred_element_type=f32)

    out_ref[...] = jnp.maximum(acc2 + bout_ref[...] + sc, 0.0).astype(out_ref.dtype)


def _fold_bn(gamma, beta, mean, var, eps=1e-5):
    s = gamma / jnp.sqrt(var + eps)
    return s, beta - mean * s


def basic_block_dilated(x_ncl, params, *, stride, dilations,
                        compute_dtype=jnp.bfloat16):
    """Forward pass of BasicBlock_dilated (eval-mode BatchNorm)."""
    d0, d1 = dilations
    assert d0 >= 1 and d1 >= 1
    pad1 = (d0 * 2 + 1) // 2                               # == d0
    B, Cin, L = x_ncl.shape
    w1_pt = params["w1"]                                   # (P, Cin, 3)
    P = w1_pt.shape[0]
    proj = (stride != 1) or (Cin != P)                     # projection shortcut?
    L1 = (L + 2 * pad1 - (2 * d0 + 1)) // stride + 1
    if proj:
        Lpool = (L + 2 - 3) // 2 + 1                       # MaxPool1d(3, 2, 1)
        assert Lpool == L1, "shortcut maxpool length must match main path"
        PL = max(pad1, 1)
    else:
        PL = pad1

    # ---- single zero-padded channels-last copy of x (covers conv + maxpool) ----
    conv_hi = PL - pad1 + 2 * d0 + (L1 - 1) * stride
    pool_hi = PL + 1 + 2 * (L1 - 1) if proj else 0
    Lp = max(conv_hi, pool_hi, PL + L - 1) + 1
    x_lc = jnp.transpose(x_ncl, (0, 2, 1))
    xpad = jnp.pad(x_lc, ((0, 0), (PL, Lp - PL - L), (0, 0))).astype(compute_dtype)

    # ---- fold BN into weight scales; keep only per-channel biases ----
    s1, b1 = _fold_bn(*params["bn1"])
    s2, b2 = _fold_bn(*params["bn2"])
    w1_t = jnp.transpose(w1_pt, (2, 1, 0)) * s1[None, None, :]     # (3, Cin, P)
    if proj:
        ssc, bsc = _fold_bn(*params["bnsc"])
        wsc = jnp.transpose(params["wsc"][:, :, 0], (1, 0)) * ssc[None, :]
        wbig = jnp.zeros((4 * Cin, 2 * P), jnp.float32)
        wbig = wbig.at[:3 * Cin, :P].set(w1_t.reshape(3 * Cin, P))
        wbig = wbig.at[3 * Cin:, P:].set(wsc)
        bout = (b2 + bsc).reshape(1, P)
    else:
        wbig = w1_t.reshape(3 * Cin, P)
        bout = b2.reshape(1, P)
    wbig = wbig.astype(compute_dtype)
    b1 = b1.reshape(1, P).astype(jnp.float32)
    bout = bout.astype(jnp.float32)

    # ---- conv2 weights: depthwise fast path, or block-diagonal dense fallback ----
    gs = P // params["groups"]
    w2_pt = params["w2"]                                   # (P, gs, 3)
    depthwise = (gs == 1)
    if depthwise:
        w2 = (jnp.transpose(w2_pt[:, 0, :], (1, 0)) * s2[None, :]) \
            .reshape(3, 1, P).astype(jnp.float32)
    else:
        cin = jnp.arange(P)
        group_mask = ((cin[:, None] // gs) == (cin[None, :] // gs)).astype(jnp.float32)
        w2 = (jnp.transpose(w2_pt, (2, 1, 0))[:, cin % gs, :]
              * group_mask[None] * s2[None, None, :]).astype(jnp.float32)

    ktot = (4 if proj else 3) * Cin
    kern = functools.partial(_block_kernel, L=L, L1=L1, stride=stride, d0=d0,
                             d1=d1, pad1=pad1, PL=PL, proj=proj,
                             depthwise=depthwise)

    def rep(shape):
        return pl.BlockSpec(shape, lambda b: (0,) * len(shape))

    out = pl.pallas_call(
        kern,
        out_shape=jax.ShapeDtypeStruct((B, L1, P), jnp.float32),
        grid=(B,),
        in_specs=[
            pl.BlockSpec((None, Lp, Cin), lambda b: (b, 0, 0)),    # padded x
            rep(tuple(wbig.shape)),                                # stacked weights
            rep((1, P)),                                           # bn1 bias
            rep(tuple(w2.shape)),                                  # conv2 taps
            rep((1, P)),                                           # bn2 (+bn_sc) bias
        ],
        out_specs=pl.BlockSpec((None, L1, P), lambda b: (b, 0, 0)),
        scratch_shapes=[
            pltpu.VMEM((L1, ktot), compute_dtype),                 # activation slab
            pltpu.VMEM((L1 + 2 * d1, P), jnp.float32),             # conv2 zero-pad
        ],
        compiler_params=pltpu.CompilerParams(
            dimension_semantics=("parallel",)),
    )(xpad, wbig, b1, w2, bout)

    return jnp.transpose(out, (0, 2, 1))                           # back to NCL


def reference(x, params, *, stride, dilations):
    """Pure-JAX reference of the PyTorch forward (eval-mode BN)."""
    d0, d1 = dilations
    pad1, pad2 = d0, d1
    dn = ('NCH', 'OIH', 'NCH')
    P = params["w1"].shape[0]
    Cin = x.shape[1]

    def bn(y, p):
        gamma, beta, mean, var = p
        s = gamma / jnp.sqrt(var + 1e-5)
        return y * s[None, :, None] + (beta - mean * s)[None, :, None]

    y = lax.conv_general_dilated(x, params["w1"], (stride,), [(pad1, pad1)],
                                 rhs_dilation=(d0,), dimension_numbers=dn)
    y = jnp.maximum(bn(y, params["bn1"]), 0.0)
    z = lax.conv_general_dilated(y, params["w2"], (1,), [(pad2, pad2)],
                                 rhs_dilation=(d1,), dimension_numbers=dn,
                                 feature_group_count=params["groups"])
    z = bn(z, params["bn2"])
    if stride != 1 or Cin != P:
        mp = lax.reduce_window(x, -jnp.inf, lax.max, (1, 1, 3), (1, 1, 2),
                               [(0, 0), (0, 0), (1, 1)])
        sc = lax.conv_general_dilated(mp, params["wsc"], (1,), [(0, 0)],
                                      dimension_numbers=dn)
        sc = bn(sc, params["bnsc"])
    else:
        sc = x
    return jnp.maximum(z + sc, 0.0)


if __name__ == "__main__":
    B, C, L = 2, 32, 16
    key = jax.random.PRNGKey(0)
    kx1, kp1, kx2, kp2 = jax.random.split(key, 4)

    def rnorm(k, shape, scale=1.0):
        return scale * jax.random.normal(k, shape, jnp.float32)

    def make_params(k, in_planes, planes, groups, proj):
        ks = jax.random.split(k, 6)

        def bn_p(kk, c):
            k0, k1, k2, k3 = jax.random.split(kk, 4)
            return (jax.random.uniform(k0, (c,), jnp.float32, 0.5, 1.5),  # gamma
                    rnorm(k1, (c,), 0.1),                                 # beta
                    rnorm(k2, (c,), 0.1),                                 # running_mean
                    jax.random.uniform(k3, (c,), jnp.float32, 0.5, 1.5))  # running_var

        p = {"groups": groups,
             "w1": rnorm(ks[0], (planes, in_planes, 3),
                         1.0 / math.sqrt(3 * in_planes)),
             "w2": rnorm(ks[1], (planes, planes // groups, 3),
                         1.0 / math.sqrt(3 * (planes // groups))),
             "bn1": bn_p(ks[2], planes),
             "bn2": bn_p(ks[3], planes)}
        if proj:
            p["wsc"] = rnorm(ks[4], (planes, in_planes, 1),
                             1.0 / math.sqrt(in_planes))
            p["bnsc"] = bn_p(ks[5], planes)
        return p

    # --- 1. projection-shortcut config (stride=2, dilations=(1,2), groups=32) ---
    params = make_params(kp1, C, C, 32, proj=True)
    x = rnorm(kx1, (B, C, L))
    ref = reference(x, params, stride=2, dilations=(1, 2))

    out = jax.block_until_ready(basic_block_dilated(
        x, params, stride=2, dilations=(1, 2), compute_dtype=jnp.float32))
    assert out.shape == ref.shape, (out.shape, ref.shape)
    np.testing.assert_allclose(np.asarray(out), np.asarray(ref),
                               rtol=1e-4, atol=1e-4)

    # bf16 MXU feeds (f32 accumulation) -- looser tolerance vs the f32 reference.
    out_bf16 = jax.block_until_ready(basic_block_dilated(
        x, params, stride=2, dilations=(1, 2), compute_dtype=jnp.bfloat16))
    np.testing.assert_allclose(np.asarray(out_bf16), np.asarray(ref),
                               rtol=1e-1, atol=1e-1)

    # --- 2. identity-shortcut config (stride=1, in_planes == planes) ---
    params_id = make_params(kp2, C, C, 32, proj=False)
    x2 = rnorm(kx2, (B, C, L))
    ref2 = reference(x2, params_id, stride=1, dilations=(1, 2))
    out_id = jax.block_until_ready(basic_block_dilated(
        x2, params_id, stride=1, dilations=(1, 2), compute_dtype=jnp.float32))
    np.testing.assert_allclose(np.asarray(out_id), np.asarray(ref2),
                               rtol=1e-4, atol=1e-4)

    print("KERNEL_OK")
</pallas_src>

<mosaic_0001>
module attributes {stable_mosaic.version = 11 : i64} {
  func.func @_block_kernel(%arg0: i32, %arg1: memref<1x17x32xf32, #tpu.memory_space<vmem>>, %arg2: memref<128x64xf32, #tpu.memory_space<vmem>>, %arg3: memref<1x32xf32, #tpu.memory_space<vmem>>, %arg4: memref<3x1x32xf32, #tpu.memory_space<vmem>>, %arg5: memref<1x32xf32, #tpu.memory_space<vmem>>, %arg6: memref<1x8x32xf32, #tpu.memory_space<vmem>>, %arg7: memref<8x128xf32, #tpu.memory_space<vmem>>, %arg8: memref<12x32xf32, #tpu.memory_space<vmem>>) attributes {dimension_semantics = [#tpu.dimension_semantics<parallel>], iteration_bounds = array<i64: 2>, scalar_prefetch = 0 : i64, scratch_operands = 2 : i64, tpu.core_type = #tpu.core_type<tc>, window_params = [{transform_indices = @transform_0, window_bounds = array<i64: 1, 17, 32>}, {pipeline_mode = #tpu.pipeline_mode<synchronous>, transform_indices = @transform_1, window_bounds = array<i64: 128, 64>}, {pipeline_mode = #tpu.pipeline_mode<synchronous>, transform_indices = @transform_2, window_bounds = array<i64: 1, 32>}, {pipeline_mode = #tpu.pipeline_mode<synchronous>, transform_indices = @transform_3, window_bounds = array<i64: 3, 1, 32>}, {pipeline_mode = #tpu.pipeline_mode<synchronous>, transform_indices = @transform_4, window_bounds = array<i64: 1, 32>}, {transform_indices = @transform_5, window_bounds = array<i64: 1, 8, 32>}]} {
    %c0 = arith.constant 0 : index
    %c0_0 = arith.constant 0 : index
    %c0_1 = arith.constant 0 : index
    %0 = tpu.strided_load %arg1[%c0, %c0_0, %c0_1] {strides = array<i32: 1, 2, 1>} : memref<1x17x32xf32, #tpu.memory_space<vmem>>, vector<1x8x32xf32>
    %1 = vector.shape_cast %0 : vector<1x8x32xf32> to vector<8x32xf32>
    %c0_2 = arith.constant 0 : index
    %c1 = arith.constant 1 : index
    %c0_3 = arith.constant 0 : index
    %2 = tpu.strided_load %arg1[%c0_2, %c1, %c0_3] {strides = array<i32: 1, 2, 1>} : memref<1x17x32xf32, #tpu.memory_space<vmem>>, vector<1x8x32xf32>
    %3 = vector.shape_cast %2 : vector<1x8x32xf32> to vector<8x32xf32>
    %c0_4 = arith.constant 0 : index
    %c2 = arith.constant 2 : index
    %c0_5 = arith.constant 0 : index
    %4 = tpu.strided_load %arg1[%c0_4, %c2, %c0_5] {strides = array<i32: 1, 2, 1>} : memref<1x17x32xf32, #tpu.memory_space<vmem>>, vector<1x8x32xf32>
    %5 = vector.shape_cast %4 : vector<1x8x32xf32> to vector<8x32xf32>
    %c0_6 = arith.constant 0 : index
    %c0_7 = arith.constant 0 : index
    %6 = vector.load %arg7[%c0_6, %c0_7] : memref<8x128xf32, #tpu.memory_space<vmem>>, vector<8x32xf32>
    tpu.vector_store %arg7[%c0_6, %c0_7], %1 {strides = array<i32>} : memref<8x128xf32, #tpu.memory_space<vmem>>, vector<8x32xf32>,
    %c0_8 = arith.constant 0 : index
    %c32 = arith.constant 32 : index
    %7 = vector.load %arg7[%c0_8, %c32] : memref<8x128xf32, #tpu.memory_space<vmem>>, vector<8x32xf32>
    tpu.vector_store %arg7[%c0_8, %c32], %3 {strides = array<i32>} : memref<8x128xf32, #tpu.memory_space<vmem>>, vector<8x32xf32>,
    %c0_9 = arith.constant 0 : index
    %c64 = arith.constant 64 : index
    %8 = vector.load %arg7[%c0_9, %c64] : memref<8x128xf32, #tpu.memory_space<vmem>>, vector<8x32xf32>
    tpu.vector_store %arg7[%c0_9, %c64], %5 {strides = array<i32>} : memref<8x128xf32, #tpu.memory_space<vmem>>, vector<8x32xf32>,
    %9 = tpu.iota {dimensions = array<i32: 0>} : vector<8x32xi32>
    %c1_i32 = arith.constant 1 : i32
    %10 = vector.broadcast %c1_i32 : i32 to vector<8x32xi32>
    %11 = arith.cmpi sge, %9, %10 : vector<8x32xi32>
    %cst = arith.constant -3.000000e+38 : f32
    %12 = vector.broadcast %cst : f32 to vector<8x32xf32>
    %13 = arith.select %11, %1, %12 : vector<8x32xi1>, vector<8x32xf32>
    %14 = arith.maximumf %13, %3 : vector<8x32xf32>
    %15 = arith.maximumf %14, %5 : vector<8x32xf32>
    %c0_10 = arith.constant 0 : index
    %c96 = arith.constant 96 : index
    %16 = vector.load %arg7[%c0_10, %c96] : memref<8x128xf32, #tpu.memory_space<vmem>>, vector<8x32xf32>
    tpu.vector_store %arg7[%c0_10, %c96], %15 {strides = array<i32>} : memref<8x128xf32, #tpu.memory_space<vmem>>, vector<8x32xf32>,
    %c0_11 = arith.constant 0 : index
    %c0_12 = arith.constant 0 : index
    %17 = vector.load %arg7[%c0_11, %c0_12] : memref<8x128xf32, #tpu.memory_space<vmem>>, vector<8x128xf32>
    %c0_13 = arith.constant 0 : index
    %c0_14 = arith.constant 0 : index
    %18 = vector.load %arg2[%c0_13, %c0_14] : memref<128x64xf32, #tpu.memory_space<vmem>>, vector<128x64xf32>
    %cst_15 = arith.constant dense<0.000000e+00> : vector<8x64xf32>
    %19 = tpu.matmul %17, %18, %cst_15 {dimension_numbers = #tpu.dot_dimension_numbers<[1], [0], [0], [1], [0, 0, 1, 1], [], []>} : vector<8x128xf32>, vector<128x64xf32>, vector<8x64xf32> -> vector<8x64xf32>
    %20 = vector.extract_strided_slice %19 {offsets = [0, 0], sizes = [8, 32], strides = [1, 1]} : vector<8x64xf32> to vector<8x32xf32>
    %c0_16 = arith.constant 0 : index
    %c0_17 = arith.constant 0 : index
    %21 = vector.load %arg3[%c0_16, %c0_17] : memref<1x32xf32, #tpu.memory_space<vmem>>, vector<1x32xf32>
    %22 = vector.broadcast %21 : vector<1x32xf32> to vector<8x32xf32>
    %23 = arith.addf %20, %22 : vector<8x32xf32>
    %cst_18 = arith.constant 0.000000e+00 : f32
    %24 = vector.broadcast %cst_18 : f32 to vector<8x32xf32>
    %25 = arith.maximumf %23, %24 : vector<8x32xf32>
    %26 = vector.extract_strided_slice %19 {offsets = [0, 32], sizes = [8, 32], strides = [1, 1]} : vector<8x64xf32> to vector<8x32xf32>
    %c0_19 = arith.constant 0 : index
    %c0_20 = arith.constant 0 : index
    %c0_21 = arith.constant 0 : index
    %27 = vector.load %arg4[%c0_19, %c0_20, %c0_21] : memref<3x1x32xf32, #tpu.memory_space<vmem>>, vector<3x1x32xf32>
    %cst_22 = arith.constant 0.000000e+00 : f32
    %28 = vector.broadcast %cst_22 : f32 to vector<2x32xf32>
    %c0_23 = arith.constant 0 : index
    %c0_24 = arith.constant 0 : index
    %29 = vector.load %arg8[%c0_23, %c0_24] : memref<12x32xf32, #tpu.memory_space<vmem>>, vector<2x32xf32>
    tpu.vector_store %arg8[%c0_23, %c0_24], %28 {strides = array<i32>} : memref<12x32xf32, #tpu.memory_space<vmem>>, vector<2x32xf32>,
    %cst_25 = arith.constant 0.000000e+00 : f32
    %30 = vector.broadcast %cst_25 : f32 to vector<2x32xf32>
    %c10 = arith.constant 10 : index
    %c0_26 = arith.constant 0 : index
    %31 = vector.load %arg8[%c10, %c0_26] : memref<12x32xf32, #tpu.memory_space<vmem>>, vector<2x32xf32>
    tpu.vector_store %arg8[%c10, %c0_26], %30 {strides = array<i32>} : memref<12x32xf32, #tpu.memory_space<vmem>>, vector<2x32xf32>,
    %c2_27 = arith.constant 2 : index
    %c0_28 = arith.constant 0 : index
    %32 = vector.load %arg8[%c2_27, %c0_28] : memref<12x32xf32, #tpu.memory_space<vmem>>, vector<8x32xf32>
    tpu.vector_store %arg8[%c2_27, %c0_28], %25 {strides = array<i32>} : memref<12x32xf32, #tpu.memory_space<vmem>>, vector<8x32xf32>,
    %c0_29 = arith.constant 0 : index
    %c0_30 = arith.constant 0 : index
    %33 = vector.load %arg8[%c0_29, %c0_30] : memref<12x32xf32, #tpu.memory_space<vmem>>, vector<8x32xf32>
    %34 = vector.extract_strided_slice %27 {offsets = [0, 0, 0], sizes = [1, 1, 32], strides = [1, 1, 1]} : vector<3x1x32xf32> to vector<1x1x32xf32>
    %35 = vector.shape_cast %34 : vector<1x1x32xf32> to vector<1x32xf32>
    %36 = vector.broadcast %35 : vector<1x32xf32> to vector<8x32xf32>
    %37 = arith.mulf %33, %36 : vector<8x32xf32>
    %38 = vector.extract_strided_slice %27 {offsets = [1, 0, 0], sizes = [1, 1, 32], strides = [1, 1, 1]} : vector<3x1x32xf32> to vector<1x1x32xf32>
    %39 = vector.shape_cast %38 : vector<1x1x32xf32> to vector<1x32xf32>
    %40 = vector.broadcast %39 : vector<1x32xf32> to vector<8x32xf32>
    %41 = arith.mulf %25, %40 : vector<8x32xf32>
    %42 = arith.addf %37, %41 : vector<8x32xf32>
    %c4 = arith.constant 4 : index
    %c0_31 = arith.constant 0 : index
    %43 = vector.load %arg8[%c4, %c0_31] : memref<12x32xf32, #tpu.memory_space<vmem>>, vector<8x32xf32>
    %44 = vector.extract_strided_slice %27 {offsets = [2, 0, 0], sizes = [1, 1, 32], strides = [1, 1, 1]} : vector<3x1x32xf32> to vector<1x1x32xf32>
    %45 = vector.shape_cast %44 : vector<1x1x32xf32> to vector<1x32xf32>
    %46 = vector.broadcast %45 : vector<1x32xf32> to vector<8x32xf32>
    %47 = arith.mulf %43, %46 : vector<8x32xf32>
    %48 = arith.addf %42, %47 : vector<8x32xf32>
    %c0_32 = arith.constant 0 : index
    %c0_33 = arith.constant 0 : index
    %49 = vector.load %arg5[%c0_32, %c0_33] : memref<1x32xf32, #tpu.memory_space<vmem>>, vector<1x32xf32>
    %50 = vector.broadcast %49 : vector<1x32xf32> to vector<8x32xf32>
    %51 = arith.addf %48, %50 : vector<8x32xf32>
    %52 = arith.addf %51, %26 : vector<8x32xf32>
    %cst_34 = arith.constant 0.000000e+00 : f32
    %53 = vector.broadcast %cst_34 : f32 to vector<8x32xf32>
    %54 = arith.maximumf %52, %53 : vector<8x32xf32>
    %c0_35 = arith.constant 0 : index
    %c0_36 = arith.constant 0 : index
    %c0_37 = arith.constant 0 : index
    %55 = vector.load %arg6[%c0_35, %c0_36, %c0_37] : memref<1x8x32xf32, #tpu.memory_space<vmem>>, vector<1x8x32xf32>
    %56 = vector.shape_cast %55 : vector<1x8x32xf32> to vector<8x32xf32>
    %57 = vector.shape_cast %54 : vector<8x32xf32> to vector<1x8x32xf32>
    tpu.vector_store %arg6[%c0_35, %c0_36, %c0_37], %57 {strides = array<i32>} : memref<1x8x32xf32, #tpu.memory_space<vmem>>, vector<1x8x32xf32>,
    return
  }
  func.func @transform_0(%arg0: i32) -> (i32, i32, i32) {
    %c0_i32 = arith.constant 0 : i32
    %c0_i32_0 = arith.constant 0 : i32
    %c0_i32_1 = arith.constant 0 : i32
    return %arg0, %c0_i32, %c0_i32_0 : i32, i32, i32
  }
  func.func @transform_1(%arg0: i32) -> (i32, i32) {
    %c0_i32 = arith.constant 0 : i32
    %c0_i32_0 = arith.constant 0 : i32
    %c0_i32_1 = arith.constant 0 : i32
    return %c0_i32, %c0_i32_0 : i32, i32
  }
  func.func @transform_2(%arg0: i32) -> (i32, i32) {
    %c0_i32 = arith.constant 0 : i32
    %c0_i32_0 = arith.constant 0 : i32
    %c0_i32_1 = arith.constant 0 : i32
    return %c0_i32, %c0_i32_0 : i32, i32
  }
  func.func @transform_3(%arg0: i32) -> (i32, i32, i32) {
    %c0_i32 = arith.constant 0 : i32
    %c0_i32_0 = arith.constant 0 : i32
    %c0_i32_1 = arith.constant 0 : i32
    %c0_i32_2 = arith.constant 0 : i32
    return %c0_i32, %c0_i32_0, %c0_i32_1 : i32, i32, i32
  }
  func.func @transform_4(%arg0: i32) -> (i32, i32) {
    %c0_i32 = arith.constant 0 : i32
    %c0_i32_0 = arith.constant 0 : i32
    %c0_i32_1 = arith.constant 0 : i32
    return %c0_i32, %c0_i32_0 : i32, i32
  }
  func.func @transform_5(%arg0: i32) -> (i32, i32, i32) {
    %c0_i32 = arith.constant 0 : i32
    %c0_i32_0 = arith.constant 0 : i32
    %c0_i32_1 = arith.constant 0 : i32
    return %arg0, %c0_i32, %c0_i32_0 : i32, i32, i32
  }
}

</mosaic_0001>

<bundles_post_ra>
// kernel: tpu_custom_call.1
= control target key start
LH: loop header
LB: loop body
LE: loop exit
PB: predicated region body
PF: predicated region fallthrough
CT: control target
= control target key end

     0   :  { %10 = vsyncpa [#allocation5], 0  ;;  %s717_s0 = inlined_call_operand.vmem [shape: f32[2,17,32], index: 0, kind: input, shape index: {}]   ;;  %s718_s1 = inlined_call_operand.vmem [shape: f32[128,64], index: 1, kind: input, shape index: {}]   ;;  %s719_s2 = inlined_call_operand.vmem [shape: f32[1,32], index: 2, kind: input, shape index: {}]   ;;  %s720_s3 = inlined_call_operand.vmem [shape: f32[3,1,32], index: 3, kind: input, shape index: {}]   ;;  %s721_s4 = inlined_call_operand.vmem [shape: f32[1,32], index: 4, kind: input, shape index: {}]   ;;  %s722_s5 = inlined_call_operand.hbm [shape: f32[2,8,32], index: 5, kind: output, shape index: {}]  }
   0x1   :  { %12 = vsyncpa [#allocation5 + $0x1], 0  ;;  %s564_s18 = smov 0   ;;  %s566_s19 = smov 0  }
   0x2   :  { %s568_s20 = smov 0   ;;  %s570_s21 = smov 0  }
   0x3 LB: > { %s585_s22 = sadd.s32 4294967295, %s528_s21   ;;  %s407_s23 = sadd.s32 4294967294, %s528_s21   ;;  %s528_s21 = sphi %s570_s21, %s728_s21   ;;  %s524_s20 = sphi %s568_s20, %s727_s20   ;;  %s520_s19 = sphi %s566_s19, %s726_s19   ;;  %s516_s18 = sphi %s564_s18, %s725_s18  }
   0x4   : > { %s589_s24 = sadd.s32 1, %s528_s21   ;;  %s135_s25 = sadd.s32 1, %s524_s20 }
   0x5   : > { %s132_s26 = ssub.s32 %s528_s21, %s589_s24  ;;  %p145_p0 = scmp.ne.s32.totalorder %s524_s20, %s520_s19 }
   0x6   : > { %p133_p1 = scmp.eq.s32.totalorder %s132_s26, 0  ;;  %p146_p2 = scmp.eq.s32.totalorder %s585_s22, 1 }
   0x7   : > { %p151_p3 = scmp.ne.s32.totalorder %s520_s19, %s516_s18  ;;  %p152_p4 = scmp.eq.s32.totalorder %s407_s23, 1 }
   0x8   : > { %s600_s27 = scalar_select %p133_p1, %s524_s20, %s135_s25  }
   0x9   : > { %p602_p5 = por %p146_p2, %p145_p0  ;;  %p606_p6 = por %p152_p4, %p151_p3 }
   0xa   : > { %p410_p7 = scmp.ge.s32.totalorder %s528_s21, 1  ;;  %p190_p8 = scmp.lt.s32.totalorder %s528_s21, 3 }
   0xc   : > { %p191_p9 = pnand %p410_p7, %p190_p8 }
   0xd   : > { %p218_p10 = scmp.lt.s32.totalorder (!%p191_p9), %s585_s22, 1  ;;  %s530_s26 = smov (!%p191_p9), 32  }
   0xe   : > { %194 = sbr.rel (%p191_p9) target bundleno = 405 (0x195), region = 40  ;;  %s532_s10 = smov (!%p191_p9), 64  }
   0xf   : > { %s416_s7 = sshll.u32 (!%p191_p9), %s585_s22, 3  ;;  %s486_s30 = scalar_lea.hbm (!%p191_p9), %s722_s5, 16 }
  0x10   : > { %s343_s13 = scalar_lea.hbm (!%p191_p9), %s722_s5, %s416_s7 }
  0x11   : > { %s347_s16 = sshll.u32 (!%p191_p9), %s343_s13, 4  ;;  %s348_s16 = int_to_ptr.hbm [resolvable:$true] %s347_s16 }
  0x13   : > { %v242_v0 = vlaneseq  ;;  %v270_v1 = vld [vmem:[%s718_s1 + $0x78] sm:$0xff]  ;;  %v269_v2 = vld [vmem:[%s718_s1 + $0x70] sm:$0xff]  ;;  %s219_s9 = scalar_select %p218_p10, %s585_s22, 1  ;;  %v268_v4 = vld [vmem:[%s718_s1 + $0x68] sm:$0xff]  ;;  %vm228_vm1 = vcmask 261120   ;;  %vm234_vm2 = vcmask 523520  }
  0x14   : > { %271 = vmatpush.msra.mxu0 %v270_v1  ;;  %v267_v5 = vld [vmem:[%s718_s1 + $0x60] sm:$0xff]  ;;  %v266_v6 = vld [vmem:[%s718_s1 + $0x58] sm:$0xff]  ;;  %v265_v11 = vld [vmem:[%s718_s1 + $0x50] sm:$0xff]  ;;  %vm240_vm3 = vcmask 785920   ;;  %vm252_vm4 = vcmask 1048320   ;;  %vm300_vm5 = vcmask 254976  }
  0x15   : > { %v243_v3 = vshrl.u32 %v242_v0, 7  ;;  %s419_s12 = smul.u32 24, %s219_s9  ;;  %v264_v13 = vld [vmem:[%s718_s1 + $0x48] sm:$0xff]  ;;  %s531_s9 = smov 96   ;;  %v263_v15 = vld [vmem:[%s718_s1 + $0x40] sm:$0xff]  ;;  %v262_v16 = vld [vmem:[%s718_s1 + $0x38] sm:$0xff] }
  0x16   : > { %272 = vmatpush.msra.mxu0 %v269_v2  ;;  %v261_v17 = vld [vmem:[%s718_s1 + $0x30] sm:$0xff]  ;;  %v260_v18 = vld [vmem:[%s718_s1 + $0x28] sm:$0xff]  ;;  %v259_v19 = vld [vmem:[%s718_s1 + $0x20] sm:$0xff]  ;;  %v533_v28 = vmov 0.0  }
  0x17   : > { %vm244_vm0 = vcmp.ge.s32.totalorder %v243_v3, 1  ;;  %s222_s17 = scalar_lea.vmem %s717_s0, %s419_s12  ;;  %v258_v20 = vld [vmem:[%s718_s1 + $0x18] sm:$0xff]  ;;  %v257_v21 = vld [vmem:[%s718_s1 + $0x10] sm:$0xff]  ;;  %v256_v22 = vld [vmem:[%s718_s1 + $0x8] sm:$0xff]  ;;  %301 = vst.msk [vmem:[#allocation3] sm:$0x3] %vm300_vm5, %v533_v28 }
  0x18   : > { %273 = vmatpush.msra.mxu0 %v268_v4  ;;  %v413_v7 = vld [vmem:[%s222_s17 + $0x1] ss:$2 sm:$0xff]  ;;  %v223_v8 = vld [vmem:[%s222_s17] ss:$2 sm:$0xff]  ;;  %302 = vst.msk [vmem:[#allocation3 + $0xa] sm:$0x3] %vm300_vm5, %v533_v28 }
  0x19   : > { %231 = vrot.lane.b32.xlu0 %v413_v7, %s530_s26  ;;  %v245_v9 = vsel %vm244_vm0, %v223_v8, -3e+38  ;;  %v414_v10 = vld [vmem:[%s222_s17 + $0x2] ss:$2 sm:$0xff]  ;;  %229 = vst.msk [vmem:[#allocation2] sm:$0xff] %vm228_vm1, %v223_v8  ;;  %s480_s17 = sshra.s32 %s348_s16, 4  ;;  %s481_s17 = int_to_ptr.hbm [resolvable:$true] %s480_s17 }
  0x1a   : > { %274 = vmatpush.msra.mxu0 %v267_v5  ;;  %v246_v12 = vmax.f32 %v245_v9, %v413_v7  ;;  %v255_v23 = vld [vmem:[%s718_s1] sm:$0xff]  ;;  %s482_s23 = scalar_lea.hbm %s481_s17, 8  ;;  %p487_p0 = scmp.lt.s32.totalorder %s481_s17, %s722_s5 }
  0x1b   : > { %v463_v29 = vld [vmem:[%s719_s2] ss:$0 sm:$0xff]  ;;  %v298_v34 = vld [vmem:[%s720_s3 + $0x1] sm:$0x1]  ;;  %v464_v40 = vld [vmem:[%s720_s3 + $0x2] ss:$0 sm:$0xff]  ;;  %p483_p11 = scmp.ne.s32.totalorder %s481_s17, %s482_s23  ;;  %p488_p1 = scmp.lt.s32.totalorder %s486_s30, %s482_s23 }
  0x1c   : > { %275 = vmatpush.msra.mxu0 %v266_v6  ;;  %v247_v14 = vmax.f32 %v246_v12, %v414_v10  ;;  %v297_v33 = vld [vmem:[%s720_s3] sm:$0x1]  ;;  %v310_v37 = vperm.slane %v298_v34, 0 }
  0x1d   : > { %v306_v35 = vperm.slane %v297_v33, 0  ;;  %v465_v44 = vld [vmem:[%s721_s4] ss:$0 sm:$0xff]  ;;  %p484_p12 = pnand %p483_p11, %p602_p5  ;;  %p489_p2 = por %p488_p1, %p487_p0 }
  0x1e   : > { %276 = vmatpush.msra.mxu0 %v265_v11  ;;  %249 = vrot.lane.b32.xlu1 %v247_v14, %s531_s9 }
  0x1f   : > { %p485_p13 = pneg %p484_p12 }
  0x20   : > { %277 = vmatpush.msra.mxu0 %v264_v13 }
  0x21   : > { %237 = vrot.lane.b32.xlu0 %v414_v10, %s532_s10  ;;  %p490_p3 = pnand %p489_p2, %p485_p13 }
  0x22   : > { %278 = vmatpush.msra.mxu0 %v263_v15 }
  0x24   : > { %279 = vmatpush.msra.mxu0 %v262_v16 }
  0x26   : > { %280 = vmatpush.msra.mxu0 %v261_v17 }
  0x28   : > { %281 = vmatpush.msra.mxu0 %v260_v18 }
  0x2a   : > { %282 = vmatpush.msra.mxu0 %v259_v19 }
  0x2c   : > { %283 = vmatpush.msra.mxu0 %v258_v20 }
  0x2e   : > { %284 = vmatpush.msra.mxu0 %v257_v21 }
  0x30   : > { %285 = vmatpush.msra.mxu0 %v256_v22 }
  0x32   : > { %286 = vmatpush.msra.mxu0 %v255_v23 }
  0x8b   : > { %v232_v24 = vpop.permute.xlu0 %231 }
  0x8c   : > { %235 = vst.msk [vmem:[#allocation2] sm:$0xff] %vm234_vm2, %v232_v24 }
  0x90   : > { %v250_v25 = vpop.permute.xlu1 %249 }
  0x93   : > { %v238_v26 = vpop.permute.xlu0 %237 }
  0x94   : > { %241 = vst.msk [vmem:[#allocation2] sm:$0xff] %vm240_vm3, %v238_v26 }
  0x95   : > { %253 = vst.msk [vmem:[#allocation2] sm:$0xff] %vm252_vm4, %v250_v25 }
  0x9c   : > { %v254_v27 = vld [vmem:[#allocation2] sm:$0xff] }
  0x9d   : > { %287 = vmatmul.f32.vlgmr.msra.gmra.mxu0 %v254_v27 }
 0x11a   : > { %v288_v30 = vpop.f32.mrf.mxu0 }
 0x11b   : > { %v295_v31 = vadd.f32 %v463_v29, %v288_v30  ;;  %326 = vrot.lane.b32.xlu1 %v288_v30, %s531_s9  ;;  %s215_s9 = sand.u32 1, %s520_s19  }
 0x11c   : > { %s411_s6 = sshll.u32 %s215_s9, 3  ;;  %s333_s22 = scalar_lea.sflag [#allocation5], %s215_s9 }
 0x11d   : > { %v296_v32 = vmax.f32 %v295_v31, 0.0  ;;  %s217_s14 = scalar_lea.vmem [#allocation4], %s411_s6 }
 0x11e   : > { %s345_s15 = sshll.u32 %s217_s14, 4  ;;  %s346_s15 = int_to_ptr.vmem [resolvable:$true] %s345_s15 }
 0x11f   : > { %303 = vst.msk [vmem:[#allocation3 + $0x2] sm:$0xff] %vm228_vm1, %v296_v32  ;;  %v312_v39 = vmul.f32 %v310_v37, %v296_v32 }
 0x126   : > { %v304_v36 = vld [vmem:[#allocation3] sm:$0xff] }
 0x127   : > { %v308_v38 = vmul.f32 %v306_v35, %v304_v36  ;;  %v314_v41 = vld [vmem:[#allocation3 + $0x4] sm:$0xff] }
 0x128   : > { %v318_v43 = vmul.f32 %v464_v40, %v314_v41 }
 0x129   : > { %v313_v42 = vadd.f32 %v312_v39, %v308_v38 }
 0x12b   : > { %v319_v45 = vadd.f32 %v318_v43, %v313_v42 }
 0x12d   : > { %v324_v46 = vadd.f32 %v465_v44, %v319_v45 }
 0x18d   : > { %v327_v47 = vpop.permute.xlu1 %326 }
 0x18e   : > { %v329_v48 = vadd.f32 %v327_v47, %v324_v46 }
 0x190   : > { %v330_v49 = vmax.f32 %v329_v48, 0.0 }
 0x192   : > { %331 = vst.msk [vmem:[%s217_s14] sm:$0xff] %vm228_vm1, %v330_v49 }
 0x193   : > { %493 = shalt.err (!%p490_p3)
}
 0x194   : > { %420 = dma.vmem_to_hbm [thread:$0]  (%p602_p5), %s346_s15, 128, %s348_s16, %s333_s22  }
 0x195 PF: > { %p426_p4 = scmp.ge.s32.totalorder %s528_s21, 2  ;;  %s359_s9 = sand.u32 1, %s516_s18  }
 0x196   : > { %s360_s8 = scalar_lea.sflag [#allocation5], %s359_s9 }
 0x197   : > { %p423_p7 = pnand %p426_p4, %p606_p6 }
 0x199   : > { %p424_p8 = pneg %p423_p7 }
 0x19b   : > { %511 = dma.done.wait (%p424_p8), %s360_s8, 128  }
 0x19c   : > { %513 = vsyncadd (%p424_p8), %s360_s8, 4294967168  ;;  %p15_p9 = scmp.ge.s32.totalorder %s589_s24, 4   ;;  %s725_s18 = smov %s520_s19 }
 0x19d   : > { %s726_s19 = smov %s524_s20  ;;  %s727_s20 = smov %s600_s27 }
 0x19e   : > { %s728_s21 = smov %s589_s24  ;;  %17 = sbr.rel (!%p15_p9) target bundleno = 3 (0x3), region = 77 }
 0x1a3   :  { %366 = vsyncpa [#allocation5], 1 }
 0x1a4   :  { %368 = vsyncpa [#allocation5 + $0x1], 1 }

</bundles_post_ra>
